<compile_context>
chip_gen: v7x
topology: tpu7x:2x2x1
jax: 0.10.0
libtpu: 0.0.40
codegen_flags: <defaults>
</compile_context>

<pallas_src>
import math

import jax
import jax.numpy as jnp
from jax.experimental import pallas as pl
from jax.experimental.pallas import tpu as pltpu


# ---------------------------------------------------------------------------
# helpers
# ---------------------------------------------------------------------------

def _supports_pipeline_mode():
    try:
        pl.BlockSpec((8, 128), lambda i: (0, 0), pipeline_mode=pl.Buffered(1))
        return True
    except Exception:
        return False


_SINGLE_BUFFER_CONSTANTS = _supports_pipeline_mode()


def _const_spec(shape):
    """BlockSpec for a grid-invariant (resident) operand on a 1-D grid."""
    idx = lambda i: (0,) * len(shape)
    if _SINGLE_BUFFER_CONSTANTS:
        # constant index_map => fetched once; no need for a double buffer.
        return pl.BlockSpec(shape, idx, pipeline_mode=pl.Buffered(1))
    return pl.BlockSpec(shape, idx)


def _vmem_budget_bytes():
    """Usable scoped-VMEM budget for this generation (capacity minus headroom)."""
    try:
        cap = int(pltpu.get_tpu_info().vmem_capacity_bytes)  # 128 MiB v5e/v6e, 64 MiB/TC v7x
    except Exception:
        cap = 64 * 1024 * 1024  # conservative fallback
    return cap - 12 * 1024 * 1024  # headroom for compiler-internal scratch


def _choose_tm(B, block_m):
    tm = min(block_m, B)
    # keep >= 2 grid steps so the "parallel" batch axis can actually shard
    # across TensorCores (v7x megacore); round to a sublane multiple.
    if B >= 16 and pl.cdiv(B, tm) < 2:
        tm = max(8, ((B // 2 + 7) // 8) * 8)
    return tm


def _prep_bias(b, H):
    b = b if b.dtype == jnp.float32 else b.astype(jnp.float32)
    return b if b.ndim == 2 else b.reshape(1, H)


def prepare_params(w1, b1, w2, b2, compute_dtype=jnp.bfloat16):
    """One-time cast of parameters to the kernel layout.

    Amortizes the HBM convert pass out of every forward call (weights in the
    MXU compute dtype, biases as f32 row vectors)."""
    H = w1.shape[0]
    return (w1.astype(compute_dtype), b1.astype(jnp.float32).reshape(1, H),
            w2.astype(compute_dtype), b2.astype(jnp.float32).reshape(1, H))


# ---------------------------------------------------------------------------
# resident-weight fused kernel (default path)
# ---------------------------------------------------------------------------

def _resnet_block_kernel(x_ref, w1_ref, b1_ref, w2_ref, b2_ref, o_ref):
    # One load of the f32 activation tile; cast in-register for the MXU
    # operand, keep the exact f32 copy for the residual add.
    x = x_ref[...]
    xc = x.astype(w1_ref.dtype)

    # linear1 -> bias -> ReLU  (MXU matmul, f32 accumulation; VPU epilogue)
    h = jnp.dot(xc, w1_ref[...], preferred_element_type=jnp.float32)
    h = jnp.maximum(h + b1_ref[...], 0.0)

    # linear2 -> bias + residual -> ReLU
    y = jnp.dot(h.astype(w2_ref.dtype), w2_ref[...],
                preferred_element_type=jnp.float32)
    y = jnp.maximum(y + b2_ref[...] + x.astype(jnp.float32), 0.0)

    o_ref[...] = y.astype(o_ref.dtype)


def _resident_forward(x, w1, b1_2d, w2, b2_2d, *, out_dtype, tm, vmem_limit):
    B, H = x.shape
    xbytes = x.dtype.itemsize
    obytes = jnp.dtype(out_dtype).itemsize
    cbytes = w1.dtype.itemsize

    cost = pl.CostEstimate(
        flops=4 * B * H * H,                       # two (B,H)x(H,H) matmuls
        transcendentals=0,
        bytes_accessed=(B * H * (xbytes + obytes)
                        + 2 * H * H * cbytes + 2 * H * 4),
    )

    return pl.pallas_call(
        _resnet_block_kernel,
        out_shape=jax.ShapeDtypeStruct((B, H), out_dtype),
        grid=(pl.cdiv(B, tm),),
        in_specs=[
            pl.BlockSpec((tm, H), lambda i: (i, 0)),   # x: streamed f32 tiles
            _const_spec((H, H)),                       # w1: resident, single-buffered
            _const_spec((1, H)),                       # b1
            _const_spec((H, H)),                       # w2
            _const_spec((1, H)),                       # b2
        ],
        out_specs=pl.BlockSpec((tm, H), lambda i: (i, 0)),
        compiler_params=pltpu.CompilerParams(
            dimension_semantics=("parallel",),
            vmem_limit_bytes=vmem_limit,
        ),
        cost_estimate=cost,
    )(x, w1, b1_2d, w2, b2_2d)


# ---------------------------------------------------------------------------
# K-panel-streamed Linear (+ReLU, optional residual) -- large-H fallback
# ---------------------------------------------------------------------------

def _make_linear_kernel(with_residual):
    if with_residual:
        def kernel(x_ref, w_ref, b_ref, r_ref, o_ref, acc_ref):
            k = pl.program_id(1)

            @pl.when(k == 0)
            def _():
                acc_ref[...] = jnp.zeros_like(acc_ref)

            acc_ref[...] += jnp.dot(x_ref[...].astype(w_ref.dtype), w_ref[...],
                                    preferred_element_type=jnp.float32)

            @pl.when(k == pl.num_programs(1) - 1)
            def _():
                y = acc_ref[...] + b_ref[...] + r_ref[...].astype(jnp.float32)
                o_ref[...] = jnp.maximum(y, 0.0).astype(o_ref.dtype)
    else:
        def kernel(x_ref, w_ref, b_ref, o_ref, acc_ref):
            k = pl.program_id(1)

            @pl.when(k == 0)
            def _():
                acc_ref[...] = jnp.zeros_like(acc_ref)

            acc_ref[...] += jnp.dot(x_ref[...].astype(w_ref.dtype), w_ref[...],
                                    preferred_element_type=jnp.float32)

            @pl.when(k == pl.num_programs(1) - 1)
            def _():
                o_ref[...] = jnp.maximum(acc_ref[...] + b_ref[...],
                                         0.0).astype(o_ref.dtype)
    return kernel


def _streamed_linear(x, w, b_2d, residual, *, out_dtype, tm, block_k,
                     vmem_budget):
    B, K = x.shape
    _, N = w.shape
    tk = min(block_k, K)
    grid = (pl.cdiv(B, tm), pl.cdiv(K, tk))

    xbytes = x.dtype.itemsize
    cbytes = w.dtype.itemsize
    obytes = jnp.dtype(out_dtype).itemsize
    rbytes = residual.dtype.itemsize if residual is not None else 0

    need = (2 * tm * tk * xbytes        # x panels, double-buffered
            + 2 * tk * N * cbytes       # weight panels, double-buffered
            + 2 * N * 4                 # bias
            + 2 * tm * N * rbytes       # residual tile
            + 2 * tm * N * obytes       # out tile
            + tm * N * 4)               # f32 accumulator scratch
    vmem_limit = int(min(vmem_budget,
                         max(need + 4 * 1024 * 1024, 32 * 1024 * 1024)))

    in_specs = [
        pl.BlockSpec((tm, tk), lambda i, k: (i, k)),   # x panel
        pl.BlockSpec((tk, N), lambda i, k: (k, 0)),    # weight K-panel
        pl.BlockSpec((1, N), lambda i, k: (0, 0)),     # bias (resident across k)
    ]
    operands = [x, w, b_2d]
    if residual is not None:
        in_specs.append(pl.BlockSpec((tm, N), lambda i, k: (i, 0)))
        operands.append(residual)

    cost = pl.CostEstimate(
        flops=2 * B * K * N,
        transcendentals=0,
        bytes_accessed=(B * K * xbytes + K * N * cbytes
                        + B * N * (obytes + rbytes) + N * 4),
    )

    return pl.pallas_call(
        _make_linear_kernel(residual is not None),
        out_shape=jax.ShapeDtypeStruct((B, N), out_dtype),
        grid=grid,
        in_specs=in_specs,
        out_specs=pl.BlockSpec((tm, N), lambda i, k: (i, 0)),
        scratch_shapes=[pltpu.VMEM((tm, N), jnp.float32)],
        compiler_params=pltpu.CompilerParams(
            dimension_semantics=("parallel", "arbitrary"),
            vmem_limit_bytes=vmem_limit,
        ),
        cost_estimate=cost,
    )(*operands)


# ---------------------------------------------------------------------------
# public wrapper
# ---------------------------------------------------------------------------

def resnet_block(x, w1, b1, w2, b2, *, block_m=512, block_k=512,
                 compute_dtype=jnp.bfloat16, out_dtype=None,
                 weights_layout="auto"):
    """x: (B, H); w1, w2: (H, H) stored as (in, out); b1, b2: (H,) or (1, H).

    Pass params already prepared via prepare_params() to avoid per-call dtype
    convert passes.  `out_dtype` may be set to bf16 to halve store traffic.
    `weights_layout`: "auto" | "resident" | "streamed".
    """
    B, H = x.shape
    if out_dtype is None:
        out_dtype = x.dtype

    # only cast when the caller did NOT pre-cast (otherwise this is a no-op).
    w1c = w1 if w1.dtype == compute_dtype else w1.astype(compute_dtype)
    w2c = w2 if w2.dtype == compute_dtype else w2.astype(compute_dtype)
    b1_2d = _prep_bias(b1, H)
    b2_2d = _prep_bias(b2, H)

    tm = _choose_tm(B, block_m)
    budget = _vmem_budget_bytes()

    cbytes = jnp.dtype(compute_dtype).itemsize
    xbytes = jnp.dtype(x.dtype).itemsize
    obytes = jnp.dtype(out_dtype).itemsize
    wbuf = 1 if _SINGLE_BUFFER_CONSTANTS else 2
    resident_need = (wbuf * 2 * H * H * cbytes     # W1 + W2 resident in VMEM
                     + wbuf * 2 * H * 4            # biases (f32)
                     + 2 * tm * H * xbytes         # x tiles, double-buffered
                     + 2 * tm * H * obytes)        # out tiles, double-buffered

    use_resident = (weights_layout == "resident"
                    or (weights_layout == "auto"
                        and resident_need + 4 * 1024 * 1024 <= budget))

    if use_resident:
        vmem_limit = int(min(budget, max(resident_need + 4 * 1024 * 1024,
                                         32 * 1024 * 1024)))
        return _resident_forward(x, w1c, b1_2d, w2c, b2_2d,
                                 out_dtype=out_dtype, tm=tm,
                                 vmem_limit=vmem_limit)

    # Large-H fallback: weights stay in HBM and are streamed as K panels.
    # TODO(synk): fuse both layers into one pallas_call with an in-kernel
    # emit_pipeline over K panels to avoid the HBM round-trip of h; also
    # consider VMEM_SHARED weight copies on v7x to avoid per-TC duplication.
    h = _streamed_linear(x, w1c, b1_2d, None, out_dtype=compute_dtype,
                         tm=tm, block_k=block_k, vmem_budget=budget)
    return _streamed_linear(h, w2c, b2_2d, x, out_dtype=out_dtype,
                            tm=tm, block_k=block_k, vmem_budget=budget)


def init_params(key, hidden_units, dtype=jnp.float32):
    """Deterministic init matching nn.Linear's default U(-1/sqrt(H), 1/sqrt(H))."""
    k1, k2, k3, k4 = jax.random.split(key, 4)
    bound = 1.0 / math.sqrt(hidden_units)
    # PyTorch stores weight as (out, in); we store the transpose (in, out)
    # so the kernel computes x @ W directly.
    w1 = jax.random.uniform(k1, (hidden_units, hidden_units), dtype, -bound, bound)
    b1 = jax.random.uniform(k2, (hidden_units,), dtype, -bound, bound)
    w2 = jax.random.uniform(k3, (hidden_units, hidden_units), dtype, -bound, bound)
    b2 = jax.random.uniform(k4, (hidden_units,), dtype, -bound, bound)
    return w1, b1, w2, b2


if __name__ == "__main__":
    key = jax.random.PRNGKey(0)
    kx, kp = jax.random.split(key)

    batch = 256          # tiled as 2 x (128, H) grid steps (keeps grid >= 2)
    hidden_units = 128   # multiple of 128 -> lane-dense tiles, unmasked stores

    x = jax.random.normal(kx, (batch, hidden_units), jnp.float32)
    w1, b1, w2, b2 = init_params(kp, hidden_units)

    # pure-JAX f32 reference (matches the PyTorch module)
    h_ref = jnp.maximum(x @ w1 + b1, 0.0)
    y_ref = jnp.maximum(h_ref @ w2 + b2 + x, 0.0)

    # (a) exact-path check: f32 compute dtype must match the reference tightly.
    p_f32 = prepare_params(w1, b1, w2, b2, compute_dtype=jnp.float32)
    out_f32 = jax.block_until_ready(
        resnet_block(x, *p_f32, compute_dtype=jnp.float32))
    assert out_f32.shape == (batch, hidden_units)
    assert jnp.allclose(out_f32, y_ref, atol=2e-4, rtol=2e-4)

    # (b) fast path (default): bf16 MXU operands with f32 accumulation and an
    #     exact f32 residual (x is never rounded to bf16 in HBM anymore).
    p_bf16 = prepare_params(w1, b1, w2, b2, compute_dtype=jnp.bfloat16)
    out = jax.block_until_ready(resnet_block(x, *p_bf16))
    assert out.shape == (batch, hidden_units)
    assert jnp.allclose(out, y_ref, atol=5e-2, rtol=5e-2)

    # (c) large-H fallback path (weights streamed as K panels), forced here at
    #     small shapes purely for coverage.
    out_s = jax.block_until_ready(
        resnet_block(x, *p_bf16, weights_layout="streamed"))
    assert out_s.shape == (batch, hidden_units)
    assert jnp.allclose(out_s, y_ref, atol=5e-2, rtol=5e-2)

    print("KERNEL_OK")
</pallas_src>

<mosaic_0001>
module attributes {stable_mosaic.version = 11 : i64} {
  func.func @_resnet_block_kernel(%arg0: i32, %arg1: memref<128x128xf32, #tpu.memory_space<vmem>>, %arg2: memref<128x128xf32, #tpu.memory_space<vmem>>, %arg3: memref<1x128xf32, #tpu.memory_space<vmem>>, %arg4: memref<128x128xf32, #tpu.memory_space<vmem>>, %arg5: memref<1x128xf32, #tpu.memory_space<vmem>>, %arg6: memref<128x128xf32, #tpu.memory_space<vmem>>) attributes {dimension_semantics = [#tpu.dimension_semantics<parallel>], iteration_bounds = array<i64: 2>, scalar_prefetch = 0 : i64, scratch_operands = 0 : i64, tpu.core_type = #tpu.core_type<tc>, window_params = [{transform_indices = @transform_0, window_bounds = array<i64: 128, 128>}, {pipeline_mode = #tpu.pipeline_mode<synchronous>, transform_indices = @transform_1, window_bounds = array<i64: 128, 128>}, {pipeline_mode = #tpu.pipeline_mode<synchronous>, transform_indices = @transform_2, window_bounds = array<i64: 1, 128>}, {pipeline_mode = #tpu.pipeline_mode<synchronous>, transform_indices = @transform_3, window_bounds = array<i64: 128, 128>}, {pipeline_mode = #tpu.pipeline_mode<synchronous>, transform_indices = @transform_4, window_bounds = array<i64: 1, 128>}, {transform_indices = @transform_5, window_bounds = array<i64: 128, 128>}]} {
    %c0 = arith.constant 0 : index
    %c0_0 = arith.constant 0 : index
    %0 = vector.load %arg1[%c0, %c0_0] : memref<128x128xf32, #tpu.memory_space<vmem>>, vector<128x128xf32>
    %c0_1 = arith.constant 0 : index
    %c0_2 = arith.constant 0 : index
    %1 = vector.load %arg2[%c0_1, %c0_2] : memref<128x128xf32, #tpu.memory_space<vmem>>, vector<128x128xf32>
    %cst = arith.constant dense<0.000000e+00> : vector<128x128xf32>
    %2 = tpu.matmul %0, %1, %cst {dimension_numbers = #tpu.dot_dimension_numbers<[1], [0], [0], [1], [0, 0, 1, 1], [], []>} : vector<128x128xf32>, vector<128x128xf32>, vector<128x128xf32> -> vector<128x128xf32>
    %c0_3 = arith.constant 0 : index
    %c0_4 = arith.constant 0 : index
    %3 = vector.load %arg3[%c0_3, %c0_4] : memref<1x128xf32, #tpu.memory_space<vmem>>, vector<1x128xf32>
    %4 = vector.broadcast %3 : vector<1x128xf32> to vector<128x128xf32>
    %5 = arith.addf %2, %4 : vector<128x128xf32>
    %cst_5 = arith.constant 0.000000e+00 : f32
    %6 = vector.broadcast %cst_5 : f32 to vector<128x128xf32>
    %7 = arith.maximumf %5, %6 : vector<128x128xf32>
    %c0_6 = arith.constant 0 : index
    %c0_7 = arith.constant 0 : index
    %8 = vector.load %arg4[%c0_6, %c0_7] : memref<128x128xf32, #tpu.memory_space<vmem>>, vector<128x128xf32>
    %cst_8 = arith.constant dense<0.000000e+00> : vector<128x128xf32>
    %9 = tpu.matmul %7, %8, %cst_8 {dimension_numbers = #tpu.dot_dimension_numbers<[1], [0], [0], [1], [0, 0, 1, 1], [], []>} : vector<128x128xf32>, vector<128x128xf32>, vector<128x128xf32> -> vector<128x128xf32>
    %c0_9 = arith.constant 0 : index
    %c0_10 = arith.constant 0 : index
    %10 = vector.load %arg5[%c0_9, %c0_10] : memref<1x128xf32, #tpu.memory_space<vmem>>, vector<1x128xf32>
    %11 = vector.broadcast %10 : vector<1x128xf32> to vector<128x128xf32>
    %12 = arith.addf %9, %11 : vector<128x128xf32>
    %13 = arith.addf %12, %0 : vector<128x128xf32>
    %cst_11 = arith.constant 0.000000e+00 : f32
    %14 = vector.broadcast %cst_11 : f32 to vector<128x128xf32>
    %15 = arith.maximumf %13, %14 : vector<128x128xf32>
    %c0_12 = arith.constant 0 : index
    %c0_13 = arith.constant 0 : index
    %16 = vector.load %arg6[%c0_12, %c0_13] : memref<128x128xf32, #tpu.memory_space<vmem>>, vector<128x128xf32>
    tpu.vector_store %arg6[%c0_12, %c0_13], %15 {strides = array<i32>} : memref<128x128xf32, #tpu.memory_space<vmem>>, vector<128x128xf32>,
    return
  }
  func.func @transform_0(%arg0: i32) -> (i32, i32) {
    %c0_i32 = arith.constant 0 : i32
    %c0_i32_0 = arith.constant 0 : i32
    return %arg0, %c0_i32 : i32, i32
  }
  func.func @transform_1(%arg0: i32) -> (i32, i32) {
    %c0_i32 = arith.constant 0 : i32
    %c0_i32_0 = arith.constant 0 : i32
    %c0_i32_1 = arith.constant 0 : i32
    return %c0_i32, %c0_i32_0 : i32, i32
  }
  func.func @transform_2(%arg0: i32) -> (i32, i32) {
    %c0_i32 = arith.constant 0 : i32
    %c0_i32_0 = arith.constant 0 : i32
    %c0_i32_1 = arith.constant 0 : i32
    return %c0_i32, %c0_i32_0 : i32, i32
  }
  func.func @transform_3(%arg0: i32) -> (i32, i32) {
    %c0_i32 = arith.constant 0 : i32
    %c0_i32_0 = arith.constant 0 : i32
    %c0_i32_1 = arith.constant 0 : i32
    return %c0_i32, %c0_i32_0 : i32, i32
  }
  func.func @transform_4(%arg0: i32) -> (i32, i32) {
    %c0_i32 = arith.constant 0 : i32
    %c0_i32_0 = arith.constant 0 : i32
    %c0_i32_1 = arith.constant 0 : i32
    return %c0_i32, %c0_i32_0 : i32, i32
  }
  func.func @transform_5(%arg0: i32) -> (i32, i32) {
    %c0_i32 = arith.constant 0 : i32
    %c0_i32_0 = arith.constant 0 : i32
    return %arg0, %c0_i32 : i32, i32
  }
}

</mosaic_0001>

<bundles_post_ra>
// kernel: tpu_custom_call.1
= control target key start
LH: loop header
LB: loop body
LE: loop exit
PB: predicated region body
PF: predicated region fallthrough
CT: control target
= control target key end

     0   :  { %10 = vsyncpa [#allocation3], 0  ;;  %s1697_s0 = inlined_call_operand.hbm [shape: f32[256,128], index: 0, kind: input, shape index: {}]   ;;  %s1698_s1 = inlined_call_operand.hbm [shape: f32[128,128], index: 1, kind: input, shape index: {}]   ;;  %s1699_s2 = inlined_call_operand.vmem [shape: f32[1,128], index: 2, kind: input, shape index: {}]   ;;  %s1700_s3 = inlined_call_operand.hbm [shape: f32[128,128], index: 3, kind: input, shape index: {}]   ;;  %s1701_s4 = inlined_call_operand.vmem [shape: f32[1,128], index: 4, kind: input, shape index: {}]   ;;  %s1702_s5 = inlined_call_operand.hbm [shape: f32[256,128], index: 5, kind: output, shape index: {}]  }
   0x1   :  { %12 = vsyncpa [#allocation3 + $0x1], 0 }
   0x2   :  { %13 = vsyncpa [#allocation6], 0 }
   0x3   :  { %14 = vsyncpa [#allocation4], 0 }
   0x4   :  { %16 = vsyncpa [#allocation4 + $0x1], 0  ;;  %s1325_s18 = smov 0   ;;  %s1327_s19 = smov 0  }
   0x5   :  { %s1329_s20 = smov 0   ;;  %s1331_s21 = smov 0  }
   0x6 LB: > { %s1346_s22 = sadd.s32 4294967295, %s1285_s21   ;;  %s796_s23 = sadd.s32 4294967294, %s1285_s21   ;;  %s1285_s21 = sphi %s1331_s21, %s1722_s21   ;;  %s1281_s20 = sphi %s1329_s20, %s1721_s20   ;;  %s1277_s19 = sphi %s1327_s19, %s1720_s19   ;;  %s1273_s18 = sphi %s1325_s18, %s1719_s18  }
   0x7   : > { %p42_p0 = scmp.ne.s32.totalorder %s1277_s19, %s1273_s18  ;;  %p1703_p1 = scmp.eq.s32.totalorder %s1346_s22, 0 }
   0x8   : > { %p156_p3 = scmp.eq.s32.totalorder %s796_s23, 1  ;;  %p797_p5 = scmp.ge.s32.totalorder %s1285_s21, 1 }
   0x9   : > { %p1355_p4 = por %p1703_p1, %p42_p0  ;;  %p163_p7 = scmp.lt.s32.totalorder %s1285_s21, 3 }
   0xa   : > { %p1360_p6 = por %p156_p3, %p42_p0  ;;  %s1287_s27 = smov [#allocation5]  }
   0xb   : > { %s1706_s24 = scalar_select %p1355_p4, 1, 0 }
   0xc   : > { %s1707_s25 = scalar_select %p1360_p6, 1, 0 }
   0xd   : > { %p1365_p8 = pnand %p797_p5, %p163_p7  ;;  %s175_s28 = sshll.u32 %s1287_s27, 4  ;;  %s1369_s28 = int_to_ptr.vmem [resolvable:$true] %s175_s28 }
   0xe   : > { %s1288_s30 = smov [#allocation7]   ;;  %s1129_s9 = scalar_lea.hbm %s1698_s1, 2048 }
   0xf   : > { %p1070_p9 = pneg %p1365_p8  ;;  %s191_s6 = sshll.u32 %s1288_s30, 4  ;;  %s1380_s6 = int_to_ptr.vmem [resolvable:$true] %s191_s6 }
  0x10   : > { %p1130_p12 = scmp.ne.s32.totalorder %s1698_s1, %s1129_s9  ;;  %p1136_p5 = scmp.lt.u32.totalorder %s1129_s9, %s1698_s1 }
  0x11   : > { %p1376_p11 = pnand %p1070_p9, %p1703_p1 }
  0x13   : > { %p1131_p13 = pneg %p1376_p11 }
  0x15   : > { %p1132_p0 = pnand %p1131_p13, %p1130_p12 }
  0x17   : > { %p1133_p3 = pneg %p1132_p0 }
  0x19   : > { %p1138_p7 = pnand %p1136_p5, %p1133_p3 }
  0x1b   : > { %1141 = shalt.err (!%p1138_p7)
}
  0x1c   : > { %s1142_s14 = scalar_lea.vmem %s1369_s28, 2048  ;;  %p1150_p2 = scmp.lt.s32.totalorder %s1369_s28, %s1369_s28 }
  0x1d   : > { %p1143_p9 = scmp.ne.s32.totalorder %s1369_s28, %s1142_s14  ;;  %p1151_p12 = scmp.lt.s32.totalorder %s1142_s14, %s1142_s14 }
  0x1f   : > { %p1145_p10 = pnand %p1143_p9, %p1131_p13  ;;  %p1152_p0 = por %p1151_p12, %p1150_p2 }
  0x21   : > { %p1146_p1 = pneg %p1145_p10 }
  0x23   : > { %p1153_p6 = pnand %p1152_p0, %p1146_p1 }
  0x25   : > { %1156 = shalt.err (!%p1153_p6)
}
  0x26   : > { %s1289_s15 = smov 128   ;;  %s1290_s16 = smov 8  }
  0x27   : > { %1073 = dma.hbm_to_vmem [thread:$0]  (!%p1376_p11), %s1698_s1, 2048, %s1369_s28, [#allocation6], %s1289_s15, %s1289_s15, %s1290_s16  }
  0x28   : > { %s1157_s7 = scalar_lea.hbm %s1700_s3, 2048 }
  0x29   : > { %p1158_p1 = scmp.ne.s32.totalorder %s1700_s3, %s1157_s7  ;;  %p1164_p10 = scmp.lt.u32.totalorder %s1157_s7, %s1700_s3 }
  0x2b   : > { %p1160_p2 = pnand %p1158_p1, %p1131_p13 }
  0x2d   : > { %p1161_p6 = pneg %p1160_p2 }
  0x2f   : > { %p1166_p3 = pnand %p1164_p10, %p1161_p6 }
  0x31   : > { %1169 = shalt.err (!%p1166_p3)
}
  0x32   : > { %s1170_s28 = scalar_lea.vmem %s1380_s6, 2048  ;;  %p1178_p12 = scmp.lt.s32.totalorder %s1380_s6, %s1380_s6 }
  0x33   : > { %p1171_p5 = scmp.ne.s32.totalorder %s1380_s6, %s1170_s28  ;;  %p1179_p0 = scmp.lt.s32.totalorder %s1170_s28, %s1170_s28 }
  0x35   : > { %p1173_p7 = pnand %p1171_p5, %p1131_p13  ;;  %p1180_p1 = por %p1179_p0, %p1178_p12 }
  0x37   : > { %p1174_p9 = pneg %p1173_p7 }
  0x39   : > { %p1181_p2 = pnand %p1180_p1, %p1174_p9 }
  0x3b   : > { %1184 = shalt.err (!%p1181_p2)
}
  0x3c   : > { %1076 = dma.hbm_to_vmem [thread:$0]  (!%p1376_p11), %s1700_s3, 2048, %s1380_s6, [#allocation6], %s1289_s15, %s1289_s15, %s1290_s16  }
  0x3d   : > { %s1441_s29 = sadd.s32 1, %s1285_s21   ;;  %s29_s14 = sadd.s32 1, %s1281_s20 }
  0x3e   : > { %s26_s17 = ssub.s32 %s1285_s21, %s1441_s29  ;;  %p36_p13 = scmp.ne.s32.totalorder %s1281_s20, %s1277_s19 }
  0x3f   : > { %p27_p6 = scmp.eq.s32.totalorder %s26_s17, 0  ;;  %p37_p10 = scmp.eq.s32.totalorder %s1285_s21, 0 }
  0x40   : > { %p1710_p3 = scmp.eq.s32.totalorder %s1346_s22, 1  ;;  %p1087_p7 = scmp.lt.s32.totalorder %s1285_s21, 2 }
  0x41   : > { %s1457_s27 = scalar_select %p27_p6, %s1281_s20, %s29_s14  }
  0x42   : > { %p1451_p5 = por %p1710_p3, %p36_p13  ;;  %p38_p9 = por %p37_p10, %p36_p13 }
  0x43   : > { %s208_s30 = sand.u32 1, %s1281_s20   ;;  %s816_s6 = sshll.u32 %s1285_s21, 11 }
  0x44   : > { %s1711_s23 = scalar_select %p1451_p5, 1, 0 }
  0x45   : > { %s801_s7 = sshll.u32 %s208_s30, 7  ;;  %s1464_s10 = scalar_lea.hbm %s1697_s0, %s816_s6 }
  0x46   : > { %s212_s11 = scalar_lea.vmem [#allocation2], %s801_s7  ;;  %p1468_p11 = pnand %p1087_p7, %p38_p9 }
  0x47   : > { %s219_s28 = sshll.u32 %s212_s11, 4  ;;  %s1472_s13 = scalar_lea.sflag [#allocation3], %s208_s30  ;;  %s1466_s28 = int_to_ptr.vmem [resolvable:$true] %s219_s28 }
  0x48   : > { %s1185_s14 = scalar_lea.hbm %s1464_s10, 2048  ;;  %p1187_p0 = pneg %p1468_p11 }
  0x49   : > { %p1186_p12 = scmp.ne.s32.totalorder %s1464_s10, %s1185_s14  ;;  %s1190_s6 = scalar_lea.hbm %s1697_s0, 4096 }
  0x4a   : > { %p1191_p13 = scmp.lt.u32.totalorder %s1464_s10, %s1697_s0  ;;  %p1192_p6 = scmp.lt.u32.totalorder %s1190_s6, %s1185_s14 }
  0x4b   : > { %p1188_p1 = pnand %p1187_p0, %p1186_p12  ;;  %p1194_p3 = scmp.lt.u32.totalorder %s1185_s14, %s1464_s10 }
  0x4c   : > { %p1193_p10 = por %p1192_p6, %p1191_p13 }
  0x4d   : > { %p1189_p2 = pneg %p1188_p1 }
  0x4e   : > { %p1195_p7 = por %p1194_p3, %p1193_p10 }
  0x50   : > { %p1196_p9 = pnand %p1195_p7, %p1189_p2 }
  0x52   : > { %1199 = shalt.err (!%p1196_p9)
}
  0x53   : > { %s1200_s30 = scalar_lea.vmem %s1466_s28, 2048  ;;  %s1291_s11 = smov [#allocation2]  }
  0x54   : > { %p1201_p12 = scmp.ne.s32.totalorder %s1466_s28, %s1200_s30  ;;  %s1205_s17 = sshll.u32 %s1291_s11, 4  ;;  %s1206_s17 = int_to_ptr.vmem [resolvable:$false] %s1205_s17 }
  0x55   : > { %s1207_s7 = scalar_lea.vmem %s1206_s17, 4096  ;;  %p1208_p4 = scmp.lt.s32.totalorder %s1466_s28, %s1206_s17 }
  0x56   : > { %p1203_p1 = pnand %p1201_p12, %p1187_p0  ;;  %p1209_p13 = scmp.lt.s32.totalorder %s1207_s7, %s1200_s30 }
  0x58   : > { %p1204_p5 = pneg %p1203_p1  ;;  %p1210_p6 = por %p1209_p13, %p1208_p4 }
  0x5a   : > { %p1211_p10 = pnand %p1210_p6, %p1204_p5 }
  0x5c   : > { %1214 = shalt.err (!%p1211_p10)
}
  0x5d   : > { %1080 = dma.hbm_to_vmem [thread:$0]  (!%p1468_p11), %s1464_s10, 2048, %s1466_s28, %s1472_s13, %s1289_s15, %s1289_s15, %s1290_s16  }
  0x5e   : > { %231 = sbr.rel (%p1365_p8) target bundleno = 620 (0x26c), region = 40  ;;  %s1506_s14 = sand.u32 (!%p1365_p8), 1, %s1277_s19  }
  0x5f   : > { %s805_s6 = sshll.u32 (!%p1365_p8), %s1506_s14, 7  ;;  %s234_s8 = scalar_lea.sflag (!%p1365_p8), [#allocation3], %s1506_s14 }
  0x60   : > { %s1512_s12 = scalar_lea.vmem (!%p1365_p8), [#allocation2], %s805_s6  ;;  %p1713_p4 = scmp.ne.s32.totalorder (!%p1365_p8), %s1706_s24, 0 }
  0x65   : > { %1260 = dma.done.wait (%p1713_p4), %s234_s8, 2048  }
  0x66   : > { %1262 = vsyncadd (%p1713_p4), %s234_s8, 4294965248  ;;  %p1714_p5 = scmp.eq.s32.totalorder %s1346_s22, 0 }
  0x68   : > { %1264 = dma.done.wait (%p1714_p5), [#allocation6], 4096   ;;  %p1715_p8 = pmov %p1714_p5 }
  0x69   : > { %v290_v0 = vld [vmem:[#allocation5] sm:$0xff]  ;;  %v291_v1 = vld [vmem:[#allocation5 + $0x8] sm:$0xff]  ;;  %v292_v2 = vld [vmem:[#allocation5 + $0x10] sm:$0xff]  ;;  %s1602_s10 = scalar_lea.vmem [#allocation8], %s805_s6  ;;  %s817_s28 = sshll.u32 %s1346_s22, 11 }
  0x6a   : > { %1266 = vsyncadd (%p1715_p8), [#allocation6], 4294963200  ;;  %v994_v3 = vpack.c.bf16 %v291_v1, %v290_v0  ;;  %v293_v4 = vld [vmem:[#allocation5 + $0x18] sm:$0xff]  ;;  %v294_v6 = vld [vmem:[#allocation5 + $0x20] sm:$0xff]  ;;  %s704_s13 = sshll.u32 %s1602_s10, 4  ;;  %s1649_s11 = scalar_lea.hbm %s1702_s5, %s817_s28  ;;  %s1651_s13 = int_to_ptr.vmem [resolvable:$true] %s704_s13 }
  0x6b   : > { %v998_v5 = vpack.c.bf16 %v293_v4, %v292_v2  ;;  %v295_v7 = vld [vmem:[#allocation5 + $0x28] sm:$0xff]  ;;  %v1523_v9 = vld [vmem:[%s1512_s12] sm:$0xff]  ;;  %v296_v10 = vld [vmem:[#allocation5 + $0x30] sm:$0xff]  ;;  %s691_s22 = scalar_lea.sflag [#allocation4], %s1506_s14  ;;  %s1215_s17 = scalar_lea.vmem %s1651_s13, 2048 }
  0x6c   : > { %995 = vmatprep.subr.bf16.mxu0 %v994_v3  ;;  %v1002_v8 = vpack.c.bf16 %v295_v7, %v294_v6  ;;  %v297_v11 = vld [vmem:[#allocation5 + $0x38] sm:$0xff]  ;;  %914 = vmatprep.mubr.f32.mxu0 %v1523_v9  ;;  %v298_v13 = vld [vmem:[#allocation5 + $0x40] sm:$0xff]  ;;  %v299_v14 = vld [vmem:[#allocation5 + $0x48] sm:$0xff]  ;;  %p1216_p11 = scmp.ne.s32.totalorder %s1651_s13, %s1215_s17  ;;  %p1716_p0 = scmp.ne.s32.totalorder %s1711_s23, 0 }
  0x6d   : > { %997 = vmatpush3.bf16.msra.mxu0 %v994_v3  ;;  %v1006_v12 = vpack.c.bf16 %v297_v11, %v296_v10  ;;  %v474_v15 = vld [vmem:[#allocation7] sm:$0xff]  ;;  %v475_v16 = vld [vmem:[#allocation7 + $0x8] sm:$0xff]  ;;  %v476_v17 = vld [vmem:[#allocation7 + $0x10] sm:$0xff]  ;;  %v1010_v21 = vpack.c.bf16 %v299_v14, %v298_v13  ;;  %s1292_s7 = smov [#allocation8]  }
  0x6e   : > { %999 = vmatprep.subr.bf16.mxu0 %v998_v5  ;;  %v477_v18 = vld [vmem:[#allocation7 + $0x18] sm:$0xff]  ;;  %v1026_v19 = vpack.c.bf16 %v475_v16, %v474_v15  ;;  %v478_v22 = vld [vmem:[#allocation7 + $0x20] sm:$0xff]  ;;  %v479_v23 = vld [vmem:[#allocation7 + $0x28] sm:$0xff]  ;;  %p1217_p2 = pnand %p1216_p11, %p1716_p0  ;;  %s1219_s6 = sshll.u32 %s1292_s7, 4  ;;  %s1220_s6 = int_to_ptr.vmem [resolvable:$false] %s1219_s6 }
  0x6f   : > { %v1030_v20 = vpack.c.bf16 %v477_v18, %v476_v17  ;;  %v300_v24 = vld [vmem:[#allocation5 + $0x50] sm:$0xff]  ;;  %v301_v25 = vld [vmem:[#allocation5 + $0x58] sm:$0xff]  ;;  %v1034_v26 = vpack.c.bf16 %v479_v23, %v478_v22  ;;  %v302_v30 = vld [vmem:[#allocation5 + $0x60] sm:$0xff]  ;;  %s1221_s8 = scalar_lea.vmem %s1220_s6, 4096  ;;  %p1222_p7 = scmp.lt.s32.totalorder %s1651_s13, %s1220_s6 }
  0x70   : > { %1027 = vmatprep.subr.bf16.mxu1 %v1026_v19  ;;  %v1014_v27 = vpack.c.bf16 %v301_v25, %v300_v24  ;;  %v480_v28 = vld [vmem:[#allocation7 + $0x30] sm:$0xff]  ;;  %v481_v29 = vld [vmem:[#allocation7 + $0x38] sm:$0xff]  ;;  %v303_v31 = vld [vmem:[#allocation5 + $0x68] sm:$0xff]  ;;  %p1218_p3 = pneg %p1217_p2  ;;  %p1223_p9 = scmp.lt.s32.totalorder %s1221_s8, %s1215_s17 }
  0x71   : > { %1001 = vmatpush3.bf16.msra.mxu0 %v998_v5  ;;  %1029 = vmatpush3.bf16.msra.mxu1 %v1026_v19  ;;  %v1038_v32 = vpack.c.bf16 %v481_v29, %v480_v28  ;;  %v1018_v33 = vpack.c.bf16 %v303_v31, %v302_v30  ;;  %v482_v34 = vld [vmem:[#allocation7 + $0x40] sm:$0xff]  ;;  %v483_v35 = vld [vmem:[#allocation7 + $0x48] sm:$0xff]  ;;  %v304_v36 = vld [vmem:[#allocation5 + $0x70] sm:$0xff] }
  0x72   : > { %1003 = vmatprep.subr.bf16.mxu0 %v1002_v8  ;;  %1031 = vmatprep.subr.bf16.mxu1 %v1030_v20  ;;  %v305_v37 = vld [vmem:[#allocation5 + $0x78] sm:$0xff]  ;;  %v1042_v38 = vpack.c.bf16 %v483_v35, %v482_v34  ;;  %v484_v40 = vld [vmem:[#allocation7 + $0x50] sm:$0xff]  ;;  %v486_v43 = vld [vmem:[#allocation7 + $0x60] sm:$0xff]  ;;  %p1224_p12 = por %p1223_p9, %p1222_p7 }
  0x73   : > { %v1022_v39 = vpack.c.bf16 %v305_v37, %v304_v36  ;;  %v485_v41 = vld [vmem:[#allocation7 + $0x58] sm:$0xff]  ;;  %v487_v44 = vld [vmem:[#allocation7 + $0x68] sm:$0xff]  ;;  %v1530_v47 = vld [vmem:[%s1512_s12 + $0x10] sm:$0xff] }
  0x74   : > { %v1046_v42 = vpack.c.bf16 %v485_v41, %v484_v40  ;;  %v1527_v45 = vld [vmem:[%s1512_s12 + $0x8] sm:$0xff]  ;;  %v1050_v46 = vpack.c.bf16 %v487_v44, %v486_v43  ;;  %v1535_v48 = vld [vmem:[%s1512_s12 + $0x18] sm:$0xff]  ;;  %v1538_v49 = vld [vmem:[%s1512_s12 + $0x20] sm:$0xff]  ;;  %p1225_p1 = pnand %p1224_p12, %p1218_p3 }
  0x75   : > { %1005 = vmatpush3.bf16.msra.mxu0 %v1002_v8  ;;  %1033 = vmatpush3.bf16.msra.mxu1 %v1030_v20  ;;  %v1543_v50 = vld [vmem:[%s1512_s12 + $0x28] sm:$0xff]  ;;  %v1546_v51 = vld [vmem:[%s1512_s12 + $0x30] sm:$0xff]  ;;  %v1551_v52 = vld [vmem:[%s1512_s12 + $0x38] sm:$0xff] }
  0x76   : > { %1007 = vmatprep.subr.bf16.mxu0 %v1006_v12  ;;  %1035 = vmatprep.subr.bf16.mxu1 %v1034_v26  ;;  %v1554_v53 = vld [vmem:[%s1512_s12 + $0x40] sm:$0xff]  ;;  %v1559_v54 = vld [vmem:[%s1512_s12 + $0x48] sm:$0xff]  ;;  %v1562_v55 = vld [vmem:[%s1512_s12 + $0x50] sm:$0xff] }
  0x77   : > { %v1567_v56 = vld [vmem:[%s1512_s12 + $0x58] sm:$0xff]  ;;  %v1570_v57 = vld [vmem:[%s1512_s12 + $0x60] sm:$0xff]  ;;  %v1575_v58 = vld [vmem:[%s1512_s12 + $0x68] sm:$0xff] }
  0x78   : > { %v1578_v59 = vld [vmem:[%s1512_s12 + $0x70] sm:$0xff]  ;;  %v1583_v60 = vld [vmem:[%s1512_s12 + $0x78] sm:$0xff]  ;;  %v809_v0 = vld [vmem:[%s1699_s2] ss:$0 sm:$0xff] }
  0x79   : > { %1009 = vmatpush3.bf16.msra.mxu0 %v1006_v12  ;;  %1037 = vmatpush3.bf16.msra.mxu1 %v1034_v26  ;;  %v488_v61 = vld [vmem:[#allocation7 + $0x70] sm:$0xff]  ;;  %v489_v62 = vld [vmem:[#allocation7 + $0x78] sm:$0xff] }
  0x7a   : > { %1011 = vmatprep.subr.bf16.mxu0 %v1010_v21  ;;  %1039 = vmatprep.subr.bf16.mxu1 %v1038_v32  ;;  %v1054_v63 = vpack.c.bf16 %v489_v62, %v488_v61 }
  0x7d   : > { %1013 = vmatpush3.bf16.msra.mxu0 %v1010_v21  ;;  %1041 = vmatpush3.bf16.msra.mxu1 %v1038_v32 }
  0x7e   : > { %1015 = vmatprep.subr.bf16.mxu0 %v1014_v27  ;;  %1043 = vmatprep.subr.bf16.mxu1 %v1042_v38 }
  0x81   : > { %1017 = vmatpush3.bf16.msra.mxu0 %v1014_v27  ;;  %1045 = vmatpush3.bf16.msra.mxu1 %v1042_v38 }
  0x82   : > { %1019 = vmatprep.subr.bf16.mxu0 %v1018_v33  ;;  %1047 = vmatprep.subr.bf16.mxu1 %v1046_v42 }
  0x85   : > { %1021 = vmatpush3.bf16.msra.mxu0 %v1018_v33  ;;  %1049 = vmatpush3.bf16.msra.mxu1 %v1046_v42 }
  0x86   : > { %1023 = vmatprep.subr.bf16.mxu0 %v1022_v39  ;;  %1051 = vmatprep.subr.bf16.mxu1 %v1050_v46 }
  0x89   : > { %1025 = vmatpush3.bf16.msra.mxu0 %v1022_v39  ;;  %1053 = vmatpush3.bf16.msra.mxu1 %v1050_v46 }
  0x8a   : > { %1055 = vmatprep.subr.bf16.mxu1 %v1054_v63 }
  0x8c   : > { %915 = vmatmul.mubr.f32.vlgmr.msra.gmra.mrb[0].mxu0 %v1527_v45 }
  0x8d   : > { %917 = vmatprep.mubr.f32.mxu0 %v1530_v47  ;;  %1057 = vmatpush3.bf16.msra.mxu1 %v1054_v63 }
  0x90   : > { %918 = vmatmul.mubr.f32.gmra.mrb[2].mxu0 %v1535_v48 }
  0x91   : > { %920 = vmatprep.mubr.f32.mxu0 %v1538_v49 }
  0x94   : > { %921 = vmatmul.mubr.f32.gmra.mrb[4].mxu0 %v1543_v50 }
  0x95   : > { %923 = vmatprep.mubr.f32.mxu0 %v1546_v51 }
  0x98   : > { %924 = vmatmul.mubr.f32.gmra.mrb[6].mxu0 %v1551_v52 }
  0x99   : > { %926 = vmatprep.mubr.f32.mxu0 %v1554_v53 }
  0x9c   : > { %927 = vmatmul.mubr.f32.gmra.mrb[8].mxu0 %v1559_v54 }
  0x9d   : > { %929 = vmatprep.mubr.f32.mxu0 %v1562_v55 }
  0xa0   : > { %930 = vmatmul.mubr.f32.gmra.mrb[10].mxu0 %v1567_v56 }
  0xa1   : > { %932 = vmatprep.mubr.f32.mxu0 %v1570_v57 }
  0xa4   : > { %933 = vmatmul.mubr.f32.gmra.mrb[12].mxu0 %v1575_v58 }
  0xa5   : > { %935 = vmatprep.mubr.f32.mxu0 %v1578_v59 }
  0xa8   : > { %936 = vmatmul.mubr.f32.gmra.mrb[14].mxu0 %v1583_v60 }
 0x15f   : > { %v916_v1 = vpop.f32.mrb[0].mxu0 }
 0x160   : > { %v385_v2 = vadd.f32 %v916_v1, %v809_v0  ;;  %v379_v3 = vpop.f32.mrb[1].mxu0 }
 0x161   : > { %v380_v4 = vadd.f32 %v809_v0, %v379_v3 }
 0x162   : > { %v459_v7 = vmax.f32 %v385_v2, 0.0  ;;  %v1592_v2 = vld [vmem:[%s1701_s4] ss:$0 sm:$0xff] }
 0x163   : > { %v919_v5 = vpop.f32.mrb[2].mxu0  ;;  %v458_v6 = vmax.f32 %v380_v4, 0.0 }
 0x164   : > { %v395_v8 = vadd.f32 %v919_v5, %v809_v0  ;;  %v389_v10 = vpop.f32.mrb[3].mxu0 }
 0x165   : > { %v390_v11 = vadd.f32 %v809_v0, %v389_v10  ;;  %970 = vmatprep.mubr.f32.mxu1 %v458_v6 }
 0x166   : > { %971 = vmatmul.mubr.f32.vlgmr.msra.gmra.mrb[0].mxu1 %v459_v7  ;;  %v461_v14 = vmax.f32 %v395_v8, 0.0 }
 0x167   : > { %v460_v12 = vmax.f32 %v390_v11, 0.0  ;;  %v922_v13 = vpop.f32.mrb[4].mxu0 }
 0x168   : > { %v405_v15 = vadd.f32 %v922_v13, %v809_v0  ;;  %v399_v16 = vpop.f32.mrb[5].mxu0 }
 0x169   : > { %v400_v17 = vadd.f32 %v809_v0, %v399_v16  ;;  %973 = vmatprep.mubr.f32.mxu1 %v460_v12 }
 0x16a   : > { %974 = vmatmul.mubr.f32.gmra.mrb[2].mxu1 %v461_v14  ;;  %v463_v20 = vmax.f32 %v405_v15, 0.0 }
 0x16b   : > { %v462_v18 = vmax.f32 %v400_v17, 0.0  ;;  %v925_v19 = vpop.f32.mrb[6].mxu0 }
 0x16c   : > { %v415_v21 = vadd.f32 %v925_v19, %v809_v0  ;;  %v409_v22 = vpop.f32.mrb[7].mxu0 }
 0x16d   : > { %v410_v23 = vadd.f32 %v809_v0, %v409_v22  ;;  %976 = vmatprep.mubr.f32.mxu1 %v462_v18 }
 0x16e   : > { %977 = vmatmul.mubr.f32.gmra.mrb[4].mxu1 %v463_v20  ;;  %v465_v26 = vmax.f32 %v415_v21, 0.0 }
 0x16f   : > { %v464_v24 = vmax.f32 %v410_v23, 0.0  ;;  %v928_v25 = vpop.f32.mrb[8].mxu0 }
 0x170   : > { %v425_v27 = vadd.f32 %v928_v25, %v809_v0  ;;  %v419_v28 = vpop.f32.mrb[9].mxu0 }
 0x171   : > { %v420_v29 = vadd.f32 %v809_v0, %v419_v28  ;;  %979 = vmatprep.mubr.f32.mxu1 %v464_v24 }
 0x172   : > { %980 = vmatmul.mubr.f32.gmra.mrb[6].mxu1 %v465_v26  ;;  %v467_v32 = vmax.f32 %v425_v27, 0.0 }
 0x173   : > { %v466_v30 = vmax.f32 %v420_v29, 0.0  ;;  %v931_v31 = vpop.f32.mrb[10].mxu0 }
 0x174   : > { %v435_v33 = vadd.f32 %v931_v31, %v809_v0  ;;  %v429_v34 = vpop.f32.mrb[11].mxu0 }
 0x175   : > { %v430_v35 = vadd.f32 %v809_v0, %v429_v34  ;;  %982 = vmatprep.mubr.f32.mxu1 %v466_v30 }
 0x176   : > { %983 = vmatmul.mubr.f32.gmra.mrb[8].mxu1 %v467_v32  ;;  %v469_v38 = vmax.f32 %v435_v33, 0.0 }
 0x177   : > { %v468_v36 = vmax.f32 %v430_v35, 0.0  ;;  %v934_v37 = vpop.f32.mrb[12].mxu0 }
 0x178   : > { %v445_v39 = vadd.f32 %v934_v37, %v809_v0  ;;  %v439_v40 = vpop.f32.mrb[13].mxu0 }
 0x179   : > { %v440_v41 = vadd.f32 %v809_v0, %v439_v40  ;;  %985 = vmatprep.mubr.f32.mxu1 %v468_v36 }
 0x17a   : > { %986 = vmatmul.mubr.f32.gmra.mrb[10].mxu1 %v469_v38  ;;  %v471_v44 = vmax.f32 %v445_v39, 0.0 }
 0x17b   : > { %v470_v42 = vmax.f32 %v440_v41, 0.0  ;;  %v937_v43 = vpop.f32.mrb[14].mxu0 }
 0x17c   : > { %v455_v46 = vadd.f32 %v937_v43, %v809_v0  ;;  %v449_v61 = vpop.f32.mrb[15].mxu0 }
 0x17d   : > { %v450_v62 = vadd.f32 %v809_v0, %v449_v61  ;;  %988 = vmatprep.mubr.f32.mxu1 %v470_v42 }
 0x17e   : > { %989 = vmatmul.mubr.f32.gmra.mrb[12].mxu1 %v471_v44  ;;  %v473_v1 = vmax.f32 %v455_v46, 0.0 }
 0x17f   : > { %v472_v63 = vmax.f32 %v450_v62, 0.0 }
 0x181   : > { %991 = vmatprep.mubr.f32.mxu1 %v472_v63 }
 0x182   : > { %992 = vmatmul.mubr.f32.gmra.mrb[14].mxu1 %v473_v1 }
 0x239   : > { %v972_v3 = vpop.f32.mrb[0].mxu1 }
 0x23a   : > { %v569_v4 = vadd.f32 %v972_v3, %v1592_v2  ;;  %v563_v5 = vpop.f32.mrb[1].mxu1 }
 0x23b   : > { %v564_v6 = vadd.f32 %v1592_v2, %v563_v5 }
 0x23c   : > { %v643_v0 = vadd.f32 %v569_v4, %v1527_v45 }
 0x23d   : > { %v642_v7 = vadd.f32 %v564_v6, %v1523_v9  ;;  %v975_v8 = vpop.f32.mrb[2].mxu1 }
 0x23e   : > { %v659_v10 = vmax.f32 %v643_v0, 0.0  ;;  %v579_v11 = vadd.f32 %v975_v8, %v1592_v2  ;;  %v573_v12 = vpop.f32.mrb[3].mxu1 }
 0x23f   : > { %v658_v13 = vmax.f32 %v642_v7, 0.0  ;;  %v574_v14 = vadd.f32 %v1592_v2, %v573_v12 }
 0x240   : > { %675 = vst [vmem:[%s1602_s10 + $0x8] sm:$0xff] %v659_v10  ;;  %v645_v45 = vadd.f32 %v579_v11, %v1535_v48 }
 0x241   : > { %674 = vst [vmem:[%s1602_s10] sm:$0xff] %v658_v13  ;;  %v644_v9 = vadd.f32 %v574_v14, %v1530_v47  ;;  %v978_v15 = vpop.f32.mrb[4].mxu1 }
 0x242   : > { %v661_v16 = vmax.f32 %v645_v45, 0.0  ;;  %v589_v17 = vadd.f32 %v978_v15, %v1592_v2  ;;  %v583_v18 = vpop.f32.mrb[5].mxu1 }
 0x243   : > { %v660_v19 = vmax.f32 %v644_v9, 0.0  ;;  %v584_v20 = vadd.f32 %v1592_v2, %v583_v18 }
 0x244   : > { %677 = vst [vmem:[%s1602_s10 + $0x18] sm:$0xff] %v661_v16  ;;  %v647_v21 = vadd.f32 %v589_v17, %v1543_v50 }
 0x245   : > { %676 = vst [vmem:[%s1602_s10 + $0x10] sm:$0xff] %v660_v19  ;;  %v646_v22 = vadd.f32 %v584_v20, %v1538_v49  ;;  %v981_v48 = vpop.f32.mrb[6].mxu1 }
 0x246   : > { %v663_v23 = vmax.f32 %v647_v21, 0.0  ;;  %v599_v47 = vadd.f32 %v981_v48, %v1592_v2  ;;  %v593_v24 = vpop.f32.mrb[7].mxu1 }
 0x247   : > { %v662_v25 = vmax.f32 %v646_v22, 0.0  ;;  %v594_v26 = vadd.f32 %v1592_v2, %v593_v24 }
 0x248   : > { %679 = vst [vmem:[%s1602_s10 + $0x28] sm:$0xff] %v663_v23  ;;  %v649_v27 = vadd.f32 %v599_v47, %v1551_v52 }
 0x249   : > { %678 = vst [vmem:[%s1602_s10 + $0x20] sm:$0xff] %v662_v25  ;;  %v648_v28 = vadd.f32 %v594_v26, %v1546_v51  ;;  %v984_v50 = vpop.f32.mrb[8].mxu1 }
 0x24a   : > { %v665_v29 = vmax.f32 %v649_v27, 0.0  ;;  %v609_v49 = vadd.f32 %v984_v50, %v1592_v2  ;;  %v603_v30 = vpop.f32.mrb[9].mxu1 }
 0x24b   : > { %v664_v31 = vmax.f32 %v648_v28, 0.0  ;;  %v604_v32 = vadd.f32 %v1592_v2, %v603_v30 }
 0x24c   : > { %681 = vst [vmem:[%s1602_s10 + $0x38] sm:$0xff] %v665_v29  ;;  %v651_v33 = vadd.f32 %v609_v49, %v1559_v54 }
 0x24d   : > { %680 = vst [vmem:[%s1602_s10 + $0x30] sm:$0xff] %v664_v31  ;;  %v650_v34 = vadd.f32 %v604_v32, %v1554_v53  ;;  %v987_v52 = vpop.f32.mrb[10].mxu1 }
 0x24e   : > { %v667_v35 = vmax.f32 %v651_v33, 0.0  ;;  %v619_v51 = vadd.f32 %v987_v52, %v1592_v2  ;;  %v613_v36 = vpop.f32.mrb[11].mxu1 }
 0x24f   : > { %v666_v37 = vmax.f32 %v650_v34, 0.0  ;;  %v614_v38 = vadd.f32 %v1592_v2, %v613_v36 }
 0x250   : > { %683 = vst [vmem:[%s1602_s10 + $0x48] sm:$0xff] %v667_v35  ;;  %v653_v39 = vadd.f32 %v619_v51, %v1567_v56 }
 0x251   : > { %682 = vst [vmem:[%s1602_s10 + $0x40] sm:$0xff] %v666_v37  ;;  %v652_v40 = vadd.f32 %v614_v38, %v1562_v55  ;;  %v990_v54 = vpop.f32.mrb[12].mxu1 }
 0x252   : > { %v669_v41 = vmax.f32 %v653_v39, 0.0  ;;  %v629_v53 = vadd.f32 %v990_v54, %v1592_v2  ;;  %v623_v42 = vpop.f32.mrb[13].mxu1 }
 0x253   : > { %v668_v43 = vmax.f32 %v652_v40, 0.0  ;;  %v624_v44 = vadd.f32 %v1592_v2, %v623_v42 }
 0x254   : > { %685 = vst [vmem:[%s1602_s10 + $0x58] sm:$0xff] %v669_v41  ;;  %v655_v46 = vadd.f32 %v629_v53, %v1575_v58 }
 0x255   : > { %684 = vst [vmem:[%s1602_s10 + $0x50] sm:$0xff] %v668_v43  ;;  %v654_v56 = vadd.f32 %v624_v44, %v1570_v57  ;;  %v993_v61 = vpop.f32.mrb[14].mxu1 }
 0x256   : > { %v671_v55 = vmax.f32 %v655_v46, 0.0  ;;  %v639_v62 = vadd.f32 %v993_v61, %v1592_v2  ;;  %v633_v63 = vpop.f32.mrb[15].mxu1 }
 0x257   : > { %v670_v1 = vmax.f32 %v654_v56, 0.0  ;;  %v634_v3 = vadd.f32 %v1592_v2, %v633_v63 }
 0x258   : > { %687 = vst [vmem:[%s1602_s10 + $0x68] sm:$0xff] %v671_v55  ;;  %v657_v58 = vadd.f32 %v639_v62, %v1583_v60 }
 0x259   : > { %686 = vst [vmem:[%s1602_s10 + $0x60] sm:$0xff] %v670_v1  ;;  %v656_v57 = vadd.f32 %v634_v3, %v1578_v59 }
 0x25a   : > { %v673_v4 = vmax.f32 %v657_v58, 0.0 }
 0x25b   : > { %v672_v2 = vmax.f32 %v656_v57, 0.0 }
 0x25c   : > { %689 = vst [vmem:[%s1602_s10 + $0x78] sm:$0xff] %v673_v4 }
 0x25d   : > { %688 = vst [vmem:[%s1602_s10 + $0x70] sm:$0xff] %v672_v2 }
 0x25e   : > { %1228 = shalt.err (!%p1225_p1)
}
 0x25f   : > { %s1229_s12 = scalar_lea.hbm %s1649_s11, 2048  ;;  %s1233_s15 = scalar_lea.hbm %s1702_s5, 4096 }
 0x260   : > { %p1230_p13 = scmp.ne.s32.totalorder %s1649_s11, %s1229_s12  ;;  %p1234_p4 = scmp.lt.u32.totalorder %s1649_s11, %s1702_s5 }
 0x261   : > { %p1235_p5 = scmp.lt.u32.totalorder %s1233_s15, %s1229_s12  ;;  %p1237_p11 = scmp.lt.u32.totalorder %s1229_s12, %s1649_s11 }
 0x262   : > { %p1231_p6 = pnand %p1230_p13, %p1716_p0 }
 0x263   : > { %p1236_p8 = por %p1235_p5, %p1234_p4 }
 0x264   : > { %p1232_p10 = pneg %p1231_p6 }
 0x265   : > { %p1238_p2 = por %p1237_p11, %p1236_p8 }
 0x267   : > { %p1239_p3 = pnand %p1238_p2, %p1232_p10 }
 0x269   : > { %1242 = shalt.err (!%p1239_p3)
}
 0x26a   : > { %s1293_s28 = smov 128   ;;  %s1294_s9 = smov 8  }
 0x26b   : > { %1068 = dma.vmem_to_hbm [thread:$0]  (%p1716_p0), %s1651_s13, 2048, %s1649_s11, %s691_s22, %s1293_s28, %s1293_s28, %s1294_s9  }
 0x26c PF: > { %s719_s30 = sand.u32 1, %s1273_s18   ;;  %p1717_p7 = scmp.ne.s32.totalorder %s1707_s25, 0 }
 0x26d   : > { %p1718_p9 = scmp.ge.s32.totalorder %s1285_s21, 2  ;;  %s720_s17 = scalar_lea.sflag [#allocation4], %s719_s30 }
 0x26f   : > { %p1082_p12 = pnand %p1718_p9, %p1717_p7 }
 0x271   : > { %1268 = dma.done.wait (!%p1082_p12), %s720_s17, 2048  }
 0x272   : > { %1270 = vsyncadd (!%p1082_p12), %s720_s17, 4294965248  ;;  %p19_p1 = scmp.ge.s32.totalorder %s1441_s29, 4   ;;  %s1719_s18 = smov %s1277_s19 }
 0x273   : > { %s1720_s19 = smov %s1281_s20  ;;  %s1721_s20 = smov %s1457_s27 }
 0x274   : > { %s1722_s21 = smov %s1441_s29  ;;  %21 = sbr.rel (!%p19_p1) target bundleno = 6 (0x6), region = 93 }
 0x27b   :  { %725 = vsyncpa [#allocation3], 1 }
 0x27c   :  { %727 = vsyncpa [#allocation3 + $0x1], 1 }
 0x27d   :  { %728 = vsyncpa [#allocation6], 1 }
 0x27e   :  { %729 = vsyncpa [#allocation4], 1 }
 0x27f   :  { %731 = vsyncpa [#allocation4 + $0x1], 1 }

</bundles_post_ra>
